<compile_context>
chip_gen: v7x
topology: tpu7x:2x2x1
jax: 0.10.0
libtpu: 0.0.40
codegen_flags: <defaults>
</compile_context>

<pallas_src>
import functools

import jax
import jax.numpy as jnp
from jax.experimental import pallas as pl
from jax.experimental.pallas import tpu as pltpu

_EPS = 1e-10
_LANES = 128
_SUBLANES = 8
_BLOCK_ELEMS = _SUBLANES * _LANES          # 1024-element alignment of the kernel prefix
_DEFAULT_TILE_ROWS = 8192                  # 8192*128*4B = 4 MiB per input per pipeline buffer
_INNER_ROWS = 32                           # 32*128 f32 = 4 vregs per temporary


def _fold_rows(x):
    """(k*8, 128) -> (8, 128) by summing 8-row bands. Pure vreg adds (no XLU)."""
    acc = x[0:_SUBLANES, :]
    for s in range(1, x.shape[0] // _SUBLANES):
        acc = acc + x[s * _SUBLANES:(s + 1) * _SUBLANES, :]
    return acc


def _eau_kernel(th_ref, rows_ref, err_ref, unc_ref, out_ref, *,
                tile_rows, inner_rows, needs_mask):
    """One grid step: stream a (tile_rows, 128) block, accumulate (num, den) partials."""
    pid = pl.program_id(0)

    @pl.when(pid == 0)
    def _init():
        out_ref[...] = jnp.zeros_like(out_ref)

    eth = th_ref[0]
    uth = th_ref[1]

    if needs_mask:
        # Rows of this tile that hold real data (can be <= 0 for fully-padded tiles).
        remaining = rows_ref[0] - pid * tile_rows
        row_iota = jax.lax.broadcasted_iota(jnp.int32, (inner_rows, _LANES), 0)

    n_chunks = tile_rows // inner_rows

    def body(c, carry):
        num_acc, den_acc = carry
        r0 = pl.multiple_of(c * inner_rows, inner_rows)
        e = err_ref[pl.ds(r0, inner_rows), :].astype(jnp.float32)
        u = unc_ref[pl.ds(r0, inner_rows), :].astype(jnp.float32)

        te = jnp.tanh(e)
        tu = jnp.tanh(u)
        low = e <= eth            # low error
        cert = u <= uth           # certain (low uncertainty)

        a = jnp.where(low, 1.0 - te, te)
        b = jnp.where(cert, 1.0 - tu, tu)
        p = a * b
        if needs_mask:
            # Zero rows past the true data extent (also kills any stale/NaN
            # garbage in the padded region of a partial last block).
            p = jnp.where(row_iota < (remaining - r0), p, 0.0)
        num_p = jnp.where(low == cert, p, 0.0)   # LC + HU

        den_acc = den_acc + _fold_rows(p)
        num_acc = num_acc + _fold_rows(num_p)
        return num_acc, den_acc

    zero = jnp.zeros((_SUBLANES, _LANES), jnp.float32)
    num_acc, den_acc = jax.lax.fori_loop(0, n_chunks, body, (zero, zero))

    out_ref[0, :, :] = out_ref[0, :, :] + num_acc
    out_ref[1, :, :] = out_ref[1, :, :] + den_acc


def _partials_jax(e, u, error_th, unc_th):
    """Pure-JAX (num, den) partial sums for the small unaligned tail."""
    e = e.astype(jnp.float32)
    u = u.astype(jnp.float32)
    te, tu = jnp.tanh(e), jnp.tanh(u)
    low, cert = e <= error_th, u <= unc_th
    a = jnp.where(low, 1.0 - te, te)
    b = jnp.where(cert, 1.0 - tu, tu)
    p = a * b
    den = jnp.sum(p)
    num = jnp.sum(jnp.where(low == cert, p, 0.0))
    return num, den


def eau_loss(error, unc, error_th, unc_th, beta=1.0,
             tile_rows=_DEFAULT_TILE_ROWS):
    """Pallas implementation of EaULoss.forward. Returns a shape-(1,) f32 array."""
    error = jnp.asarray(error).reshape(-1)
    unc = jnp.asarray(unc).reshape(-1)
    if not jnp.issubdtype(error.dtype, jnp.floating):
        error = error.astype(jnp.float32)
    if not jnp.issubdtype(unc.dtype, jnp.floating):
        unc = unc.astype(jnp.float32)
    n = error.shape[0]

    # The kernel covers the 1024-aligned prefix (so rows % 8 == 0 and, for
    # aligned n, the reshape below is a zero-copy bitcast).  The <=1023
    # element tail is folded in with plain JAX below.
    n_main = (n // _BLOCK_ELEMS) * _BLOCK_ELEMS
    n_tail = n - n_main

    num = jnp.zeros((), jnp.float32)
    den = jnp.zeros((), jnp.float32)

    if n_main > 0:
        rows = n_main // _LANES
        err_2d = error[:n_main].reshape(rows, _LANES)
        unc_2d = unc[:n_main].reshape(rows, _LANES)

        # Grid tile: multiple of the inner chunk, capped by the array size.
        tr = max(_SUBLANES, (int(tile_rows) // _SUBLANES) * _SUBLANES)
        tr = min(tr, rows)
        inner = min(_INNER_ROWS, tr)
        tr = max(inner, (tr // inner) * inner)
        num_tiles = pl.cdiv(rows, tr)
        needs_mask = (rows % tr) != 0

        th = jnp.array([error_th, unc_th], dtype=jnp.float32)
        rows_arr = jnp.array([rows], dtype=jnp.int32)

        kernel = functools.partial(_eau_kernel, tile_rows=tr, inner_rows=inner,
                                   needs_mask=needs_mask)

        # 2 inputs x 2 pipeline buffers x (tr,128) f32, plus headroom.
        vmem_limit = int(max(4 * tr * _LANES * 4 + (4 << 20), 32 << 20))

        part = pl.pallas_call(
            kernel,
            out_shape=jax.ShapeDtypeStruct((2, _SUBLANES, _LANES), jnp.float32),
            grid_spec=pltpu.PrefetchScalarGridSpec(
                num_scalar_prefetch=2,           # thresholds f32[2], rows i32[1]
                grid=(num_tiles,),
                in_specs=[
                    pl.BlockSpec((tr, _LANES), lambda i, th, nr: (i, 0)),  # error
                    pl.BlockSpec((tr, _LANES), lambda i, th, nr: (i, 0)),  # unc
                ],
                out_specs=pl.BlockSpec((2, _SUBLANES, _LANES),
                                       lambda i, th, nr: (0, 0, 0)),
            ),
            compiler_params=pltpu.CompilerParams(
                dimension_semantics=("arbitrary",),
                vmem_limit_bytes=vmem_limit),
        )(th, rows_arr, err_2d, unc_2d)

        num = num + jnp.sum(part[0])
        den = den + jnp.sum(part[1])

    if n_tail > 0:
        t_num, t_den = _partials_jax(error[n_main:], unc[n_main:], error_th, unc_th)
        num = num + t_num
        den = den + t_den

    eau = num / (den + _EPS)
    loss = -1.0 * float(beta) * jnp.log(eau + _EPS)
    return jnp.reshape(loss, (1,)).astype(jnp.float32)


def _eau_loss_ref(error, unc, error_th, unc_th, beta=1.0):
    """Pure-JAX reference mirroring the PyTorch module (masked-sum form)."""
    e = jnp.asarray(error, jnp.float32).reshape(-1)
    u = jnp.asarray(unc, jnp.float32).reshape(-1)
    te, tu = jnp.tanh(e), jnp.tanh(u)
    low, high = e <= error_th, e > error_th
    cert, unce = u <= unc_th, u > unc_th
    n_lc = jnp.sum(jnp.where(low & cert, (1 - te) * (1 - tu), 0.0))
    n_lu = jnp.sum(jnp.where(low & unce, (1 - te) * tu, 0.0))
    n_hc = jnp.sum(jnp.where(high & cert, te * (1 - tu), 0.0))
    n_hu = jnp.sum(jnp.where(high & unce, te * tu, 0.0))
    eau = (n_lc + n_hu) / (n_lc + n_lu + n_hc + n_hu + _EPS)
    return jnp.reshape(-1.0 * beta * jnp.log(eau + _EPS), (1,))


if __name__ == "__main__":
    key = jax.random.PRNGKey(0)
    keys = jax.random.split(key, 10)

    error_th = 1.0
    unc_th = 0.5
    beta = 1.0

    def check(name, err, unc, **kw):
        out = jax.block_until_ready(eau_loss(err, unc, error_th, unc_th, beta=beta, **kw))
        ref = jax.block_until_ready(_eau_loss_ref(err, unc, error_th, unc_th, beta=beta))
        assert out.shape == (1,), (name, out.shape)
        assert jnp.allclose(out, ref, rtol=1e-4, atol=1e-5), (name, out, ref)

    def mk(ke, ku, n):
        e = jax.random.uniform(ke, (n,), jnp.float32, minval=0.0, maxval=2.0)
        u = jax.random.uniform(ku, (n,), jnp.float32, minval=0.0, maxval=1.0)
        return e, u

    # Case 1: tiny N (< one 1024-element block) -> pure-JAX tail path only.
    e1, u1 = mk(keys[0], keys[1], 500)
    check("tiny", e1, u1)

    # Case 2: multiple grid tiles, no partial tile, no in-kernel mask, JAX tail.
    e2, u2 = mk(keys[2], keys[3], 5000)
    check("multi_tile", e2, u2, tile_rows=8)

    # Case 3: partial last grid tile (mask path) + JAX tail.
    e3, u3 = mk(keys[4], keys[5], 10000)
    check("partial_tile", e3, u3, tile_rows=16)

    # Case 4: exactly 1024-aligned, single tile, zero-copy reshape, no mask/tail.
    e4, u4 = mk(keys[6], keys[7], 4096)
    check("aligned", e4, u4)

    # Case 5: larger aligned input exercising the multi-chunk inner fori_loop.
    e5, u5 = mk(keys[8], keys[9], 65536)
    check("inner_loop", e5, u5)

    print("KERNEL_OK")
</pallas_src>

<mosaic_0001>
module attributes {stable_mosaic.version = 11 : i64} {
  func.func @_eau_kernel(%arg0: i32, %arg1: memref<2xf32, #tpu.memory_space<smem>>, %arg2: memref<1xi32, #tpu.memory_space<smem>>, %arg3: memref<8x128xf32, #tpu.memory_space<vmem>>, %arg4: memref<8x128xf32, #tpu.memory_space<vmem>>, %arg5: memref<2x8x128xf32, #tpu.memory_space<vmem>>) attributes {dimension_semantics = [#tpu.dimension_semantics<arbitrary>], iteration_bounds = array<i64: 4>, scalar_prefetch = 2 : i64, scratch_operands = 0 : i64, tpu.core_type = #tpu.core_type<tc>, window_params = [{transform_indices = @transform_0, window_bounds = array<i64: 8, 128>}, {transform_indices = @transform_1, window_bounds = array<i64: 8, 128>}, {pipeline_mode = #tpu.pipeline_mode<synchronous>, transform_indices = @transform_2, window_bounds = array<i64: 2, 8, 128>}]} {
    %c0_i32 = arith.constant 0 : i32
    %0 = arith.cmpi eq, %arg0, %c0_i32 : i32
    %1 = arith.extui %0 : i1 to i32
    %c0_i32_0 = arith.constant 0 : i32
    %2 = arith.cmpi ne, %1, %c0_i32_0 : i32
    scf.if %2 {
      %cst_20 = arith.constant 0.000000e+00 : f32
      %43 = vector.broadcast %cst_20 : f32 to vector<2x8x128xf32>
      %c0_21 = arith.constant 0 : index
      %c0_22 = arith.constant 0 : index
      %c0_23 = arith.constant 0 : index
      %44 = vector.load %arg5[%c0_21, %c0_22, %c0_23] : memref<2x8x128xf32, #tpu.memory_space<vmem>>, vector<2x8x128xf32>
      tpu.vector_store %arg5[%c0_21, %c0_22, %c0_23], %43 {strides = array<i32>} : memref<2x8x128xf32, #tpu.memory_space<vmem>>, vector<2x8x128xf32>,
    } else {
    }
    %c0 = arith.constant 0 : index
    %3 = memref.load %arg1[%c0] : memref<2xf32, #tpu.memory_space<smem>>
    %c1 = arith.constant 1 : index
    %4 = memref.load %arg1[%c1] : memref<2xf32, #tpu.memory_space<smem>>
    %cst = arith.constant 0.000000e+00 : f32
    %5 = vector.broadcast %cst : f32 to vector<8x128xf32>
    %c0_i32_1 = arith.constant 0 : i32
    %c8_i32 = arith.constant 8 : i32
    %6 = arith.muli %c0_i32_1, %c8_i32 : i32
    %7 = tpu.assume_multiple %6, 8 : i32
    %8 = arith.index_cast %7 : i32 to index
    %c0_2 = arith.constant 0 : index
    %9 = vector.load %arg3[%8, %c0_2] : memref<8x128xf32, #tpu.memory_space<vmem>>, vector<8x128xf32>
    %10 = arith.index_cast %7 : i32 to index
    %c0_3 = arith.constant 0 : index
    %11 = vector.load %arg4[%10, %c0_3] : memref<8x128xf32, #tpu.memory_space<vmem>>, vector<8x128xf32>
    %12 = math.tanh %9 : vector<8x128xf32>
    %13 = math.tanh %11 : vector<8x128xf32>
    %14 = vector.broadcast %3 : f32 to vector<8x128xf32>
    %15 = arith.cmpf ole, %9, %14 : vector<8x128xf32>
    %16 = vector.broadcast %4 : f32 to vector<8x128xf32>
    %17 = arith.cmpf ole, %11, %16 : vector<8x128xf32>
    %cst_4 = arith.constant 1.000000e+00 : f32
    %18 = vector.broadcast %cst_4 : f32 to vector<8x128xf32>
    %19 = arith.subf %18, %12 : vector<8x128xf32>
    %20 = arith.select %15, %19, %12 : vector<8x128xi1>, vector<8x128xf32>
    %cst_5 = arith.constant 1.000000e+00 : f32
    %21 = vector.broadcast %cst_5 : f32 to vector<8x128xf32>
    %22 = arith.subf %21, %13 : vector<8x128xf32>
    %23 = arith.select %17, %22, %13 : vector<8x128xi1>, vector<8x128xf32>
    %24 = arith.mulf %20, %23 : vector<8x128xf32>
    %25 = arith.xori %15, %17 : vector<8x128xi1>
    %cst_6 = arith.constant dense<true> : vector<8x128xi1>
    %26 = arith.xori %25, %cst_6 : vector<8x128xi1>
    %cst_7 = arith.constant 0.000000e+00 : f32
    %27 = vector.broadcast %cst_7 : f32 to vector<8x128xf32>
    %28 = arith.select %26, %24, %27 : vector<8x128xi1>, vector<8x128xf32>
    %29 = arith.addf %5, %24 : vector<8x128xf32>
    %30 = arith.addf %5, %28 : vector<8x128xf32>
    %c1_i32 = arith.constant 1 : i32
    %c0_8 = arith.constant 0 : index
    %c0_9 = arith.constant 0 : index
    %c0_10 = arith.constant 0 : index
    %31 = vector.load %arg5[%c0_8, %c0_9, %c0_10] : memref<2x8x128xf32, #tpu.memory_space<vmem>>, vector<1x8x128xf32>
    %32 = vector.shape_cast %31 : vector<1x8x128xf32> to vector<8x128xf32>
    %33 = arith.addf %32, %30 : vector<8x128xf32>
    %c0_11 = arith.constant 0 : index
    %c0_12 = arith.constant 0 : index
    %c0_13 = arith.constant 0 : index
    %34 = vector.load %arg5[%c0_11, %c0_12, %c0_13] : memref<2x8x128xf32, #tpu.memory_space<vmem>>, vector<1x8x128xf32>
    %35 = vector.shape_cast %34 : vector<1x8x128xf32> to vector<8x128xf32>
    %36 = vector.shape_cast %33 : vector<8x128xf32> to vector<1x8x128xf32>
    tpu.vector_store %arg5[%c0_11, %c0_12, %c0_13], %36 {strides = array<i32>} : memref<2x8x128xf32, #tpu.memory_space<vmem>>, vector<1x8x128xf32>,
    %c1_14 = arith.constant 1 : index
    %c0_15 = arith.constant 0 : index
    %c0_16 = arith.constant 0 : index
    %37 = vector.load %arg5[%c1_14, %c0_15, %c0_16] : memref<2x8x128xf32, #tpu.memory_space<vmem>>, vector<1x8x128xf32>
    %38 = vector.shape_cast %37 : vector<1x8x128xf32> to vector<8x128xf32>
    %39 = arith.addf %38, %29 : vector<8x128xf32>
    %c1_17 = arith.constant 1 : index
    %c0_18 = arith.constant 0 : index
    %c0_19 = arith.constant 0 : index
    %40 = vector.load %arg5[%c1_17, %c0_18, %c0_19] : memref<2x8x128xf32, #tpu.memory_space<vmem>>, vector<1x8x128xf32>
    %41 = vector.shape_cast %40 : vector<1x8x128xf32> to vector<8x128xf32>
    %42 = vector.shape_cast %39 : vector<8x128xf32> to vector<1x8x128xf32>
    tpu.vector_store %arg5[%c1_17, %c0_18, %c0_19], %42 {strides = array<i32>} : memref<2x8x128xf32, #tpu.memory_space<vmem>>, vector<1x8x128xf32>,
    return
  }
  func.func @transform_0(%arg0: i32, %arg1: memref<2xf32, #tpu.memory_space<smem>>, %arg2: memref<1xi32, #tpu.memory_space<smem>>) -> (i32, i32) {
    %c0_i32 = arith.constant 0 : i32
    %c0_i32_0 = arith.constant 0 : i32
    return %arg0, %c0_i32 : i32, i32
  }
  func.func @transform_1(%arg0: i32, %arg1: memref<2xf32, #tpu.memory_space<smem>>, %arg2: memref<1xi32, #tpu.memory_space<smem>>) -> (i32, i32) {
    %c0_i32 = arith.constant 0 : i32
    %c0_i32_0 = arith.constant 0 : i32
    return %arg0, %c0_i32 : i32, i32
  }
  func.func @transform_2(%arg0: i32, %arg1: memref<2xf32, #tpu.memory_space<smem>>, %arg2: memref<1xi32, #tpu.memory_space<smem>>) -> (i32, i32, i32) {
    %c0_i32 = arith.constant 0 : i32
    %c0_i32_0 = arith.constant 0 : i32
    %c0_i32_1 = arith.constant 0 : i32
    %c0_i32_2 = arith.constant 0 : i32
    return %c0_i32, %c0_i32_0, %c0_i32_1 : i32, i32, i32
  }
}

</mosaic_0001>

<bundles_post_ra>
// kernel: tpu_custom_call.1
= control target key start
LH: loop header
LB: loop body
LE: loop exit
PB: predicated region body
PF: predicated region fallthrough
CT: control target
= control target key end

     0   :  { %s737_s0 = inlined_call_operand.vmem [shape: f32[2], index: 0, kind: input, shape index: {}]   ;;  %s738_s1 = inlined_call_operand.<no memory space> [shape: s32[1], index: 1, kind: input, shape index: {}]   ;;  %s739_s2 = inlined_call_operand.hbm [shape: f32[32,128], index: 2, kind: input, shape index: {}]   ;;  %s740_s3 = inlined_call_operand.hbm [shape: f32[32,128], index: 3, kind: input, shape index: {}]   ;;  %s741_s4 = inlined_call_operand.hbm [shape: f32[2,8,128], index: 4, kind: output, shape index: {}]  }
   0x1   :  { %s9_s17 = sshll.u32 %s737_s0, 4  ;;  %s10_s17 = int_to_ptr.vmem [resolvable:$true] %s9_s17 }
   0x2   :  { %s384_s18 = scalar_lea.vmem %s10_s17, 16  ;;  %p389_p1 = scmp.lt.s32.totalorder %s10_s17, %s10_s17 }
   0x3   :  { %p385_p0 = scmp.ne.s32.totalorder %s10_s17, %s384_s18  ;;  %p390_p2 = scmp.lt.s32.totalorder %s384_s18, %s384_s18 }
   0x5   :  { %p391_p3 = por %p390_p2, %p389_p1 }
   0x7   :  { %p392_p4 = pnand %p391_p3, %p385_p0 }
   0x9   :  { %395 = shalt.err (!%p392_p4)  }
   0xa   :  { %s528_s1 = smov [#allocation3]  }
   0xb   :  { %12 = dma.vmem_to_smem %s10_s17, 16, %s528_s1, [#allocation2] }
   0xc   :  { %498 = dma.done.wait [#allocation2], 16 }
   0xd   :  { %499 = vsyncadd [#allocation2], 4294967280 }
   0xe   :  { %15 = sfence }
   0xf   :  { %16 = vsyncpa [#allocation6], 0 }
  0x10   :  { %18 = vsyncpa [#allocation6 + $0x1], 0 }
  0x11   :  { %19 = vsyncpa [#allocation9], 0 }
  0x12   :  { %21 = vsyncpa [#allocation9 + $0x1], 0 }
  0x13   :  { %22 = vsyncpa [#allocation7], 0  ;;  %s564_s19 = smov 0   ;;  %s566_s0 = smov 0  }
  0x14   :  { %s568_s20 = smov 0   ;;  %s570_s21 = smov 0  }
  0x15 LB: > { %s583_s22 = sadd.s32 4294967295, %s526_s21   ;;  %s586_s23 = sadd.s32 1, %s526_s21   ;;  %s526_s21 = sphi %s570_s21, %s753_s21   ;;  %s522_s20 = sphi %s568_s20, %s752_s20   ;;  %s518_s0 = sphi %s566_s0, %s751_s0   ;;  %s514_s19 = sphi %s564_s19, %s750_s19  }
  0x16   : > { %s32_s24 = ssub.s32 %s526_s21, %s586_s23  ;;  %s35_s25 = sadd.s32 1, %s522_s20 }
  0x17   : > { %p33_p5 = scmp.eq.s32.totalorder %s32_s24, 0  ;;  %p42_p6 = scmp.ne.s32.totalorder %s522_s20, %s518_s0 }
  0x18   : > { %p43_p7 = scmp.eq.s32.totalorder %s526_s21, 0  ;;  %p48_p8 = scmp.ne.s32.totalorder %s518_s0, %s514_s19 }
  0x19   : > { %s596_s26 = scalar_select %p33_p5, %s522_s20, %s35_s25  }
  0x1a   : > { %p44_p9 = por %p43_p7, %p42_p6  ;;  %p49_p10 = scmp.eq.s32.totalorder %s583_s22, 0 }
  0x1b   : > { %p339_p11 = scmp.lt.s32.totalorder %s526_s21, 4  ;;  %s605_s28 = sand.u32 1, %s522_s20  }
  0x1c   : > { %p600_p12 = por %p49_p10, %p48_p8  ;;  %s311_s29 = sshll.u32 %s605_s28, 3 }
  0x1d   : > { %s312_s30 = sshll.u32 %s526_s21, 7  ;;  %s123_s8 = scalar_lea.vmem [#allocation5], %s311_s29 }
  0x1e   : > { %s743_s27 = scalar_select %p600_p12, 1, 0 }
  0x1f   : > { %s614_s7 = scalar_lea.hbm %s739_s2, %s312_s30  ;;  %s130_s9 = sshll.u32 %s123_s8, 4  ;;  %s618_s9 = int_to_ptr.vmem [resolvable:$true] %s130_s9 }
  0x20   : > { %p620_p13 = pnand %p339_p11, %p44_p9  ;;  %s120_s11 = scalar_lea.sflag [#allocation6], %s605_s28 }
  0x21   : > { %s396_s12 = scalar_lea.hbm %s614_s7, 128  ;;  %s401_s15 = scalar_lea.hbm %s739_s2, 512 }
  0x22   : > { %p397_p2 = scmp.ne.s32.totalorder %s614_s7, %s396_s12  ;;  %p398_p3 = pneg %p620_p13 }
  0x23   : > { %p402_p6 = scmp.lt.u32.totalorder %s614_s7, %s739_s2  ;;  %p403_p7 = scmp.lt.u32.totalorder %s401_s15, %s396_s12 }
  0x24   : > { %p399_p4 = pnand %p398_p3, %p397_p2  ;;  %p405_p9 = scmp.lt.u32.totalorder %s396_s12, %s614_s7 }
  0x25   : > { %p404_p8 = por %p403_p7, %p402_p6 }
  0x26   : > { %p400_p5 = pneg %p399_p4 }
  0x27   : > { %p406_p10 = por %p405_p9, %p404_p8 }
  0x29   : > { %p407_p11 = pnand %p406_p10, %p400_p5 }
  0x2b   : > { %410 = shalt.err (!%p407_p11)
}
  0x2c   : > { %s411_s18 = scalar_lea.vmem %s618_s9, 128  ;;  %s529_s1 = smov [#allocation5]  }
  0x2d   : > { %p412_p2 = scmp.ne.s32.totalorder %s618_s9, %s411_s18  ;;  %s416_s19 = sshll.u32 %s529_s1, 4  ;;  %s417_s19 = int_to_ptr.vmem [resolvable:$false] %s416_s19 }
  0x2e   : > { %s418_s24 = scalar_lea.vmem %s417_s19, 256  ;;  %p419_p1 = scmp.lt.s32.totalorder %s618_s9, %s417_s19 }
  0x2f   : > { %p414_p4 = pnand %p412_p2, %p398_p3  ;;  %p420_p6 = scmp.lt.s32.totalorder %s418_s24, %s411_s18 }
  0x31   : > { %p415_p0 = pneg %p414_p4  ;;  %p421_p7 = por %p420_p6, %p419_p1 }
  0x33   : > { %p422_p8 = pnand %p421_p7, %p415_p0 }
  0x35   : > { %425 = shalt.err (!%p422_p8)
}
  0x36   : > { %335 = dma.hbm_to_vmem [thread:$0]  (!%p620_p13), %s614_s7, 128, %s618_s9, %s120_s11  }
  0x37   : > { %p745_p5 = scmp.lt.s32.totalorder %s526_s21, 5  ;;  %p746_p9 = scmp.ge.s32.totalorder %s526_s21, 1 }
  0x38   : > { %s665_s8 = scalar_lea.hbm %s740_s3, %s312_s30  ;;  %s141_s12 = scalar_lea.vmem [#allocation8], %s311_s29 }
  0x39   : > { %p656_p10 = pnand %p746_p9, %p745_p5  ;;  %s148_s13 = sshll.u32 %s141_s12, 4  ;;  %s149_s13 = int_to_ptr.vmem [resolvable:$true] %s148_s13 }
  0x3a   : > { %s138_s7 = scalar_lea.sflag [#allocation9], %s605_s28  ;;  %s426_s9 = scalar_lea.hbm %s665_s8, 128 }
  0x3b   : > { %s747_s25 = scalar_select %p656_p10, 1, 0 }
  0x3c   : > { %p427_p0 = scmp.ne.s32.totalorder %s665_s8, %s426_s9  ;;  %s431_s30 = scalar_lea.hbm %s740_s3, 512 }
  0x3d   : > { %p432_p2 = scmp.lt.u32.totalorder %s665_s8, %s740_s3  ;;  %p433_p4 = scmp.lt.u32.totalorder %s431_s30, %s426_s9 }
  0x3e   : > { %p429_p1 = pnand %p427_p0, %p398_p3  ;;  %p435_p7 = scmp.lt.u32.totalorder %s426_s9, %s665_s8 }
  0x3f   : > { %p434_p6 = por %p433_p4, %p432_p2 }
  0x40   : > { %p430_p11 = pneg %p429_p1 }
  0x41   : > { %p436_p8 = por %p435_p7, %p434_p6 }
  0x43   : > { %p437_p5 = pnand %p436_p8, %p430_p11 }
  0x45   : > { %440 = shalt.err (!%p437_p5)
}
  0x46   : > { %s441_s28 = scalar_lea.vmem %s149_s13, 128  ;;  %s530_s29 = smov [#allocation8]  }
  0x47   : > { %p442_p9 = scmp.ne.s32.totalorder %s149_s13, %s441_s28  ;;  %s446_s16 = sshll.u32 %s530_s29, 4  ;;  %s447_s16 = int_to_ptr.vmem [resolvable:$false] %s446_s16 }
  0x48   : > { %s448_s17 = scalar_lea.vmem %s447_s16, 256  ;;  %p449_p12 = scmp.lt.s32.totalorder %s149_s13, %s447_s16 }
  0x49   : > { %p444_p0 = pnand %p442_p9, %p398_p3  ;;  %p450_p10 = scmp.lt.s32.totalorder %s448_s17, %s441_s28 }
  0x4b   : > { %p445_p1 = pneg %p444_p0  ;;  %p451_p2 = por %p450_p10, %p449_p12 }
  0x4d   : > { %p452_p4 = pnand %p451_p2, %p445_p1 }
  0x4f   : > { %455 = shalt.err (!%p452_p4)
}
  0x50   : > { %338 = dma.hbm_to_vmem [thread:$0]  (!%p620_p13), %s665_s8, 128, %s149_s13, %s138_s7  }
  0x51   : > { %p748_p11 = scmp.ne.s32.totalorder %s747_s25, 0 }
  0x52   : > { %s159_s18 = sand.u32 (!%p748_p11), 1, %s518_s0   ;;  %p749_p3 = scmp.ne.s32.totalorder (!%p748_p11), %s743_s27, 0 }
  0x53   : > { %157 = sbr.rel (%p748_p11) target bundleno = 139 (0x8b), region = 28  ;;  %s316_s1 = sshll.u32 (!%p748_p11), %s159_s18, 3 }
  0x54   : > { %s160_s19 = scalar_lea.sflag (!%p748_p11), [#allocation6], %s159_s18  ;;  %s163_s24 = scalar_lea.vmem (!%p748_p11), [#allocation5], %s316_s1 }
  0x5a   : > { %501 = dma.done.wait (%p749_p3), %s160_s19, 128  }
  0x5b   : > { %503 = vsyncadd (%p749_p3), %s160_s19, 4294967168  ;;  %s169_s5 = scalar_lea.sflag [#allocation9], %s159_s18  ;;  %s172_s6 = scalar_lea.vmem [#allocation8], %s316_s1 }
  0x5c   : > { %505 = dma.done.wait (%p749_p3), %s169_s5, 128  }
  0x5d   : > { %507 = vsyncadd (%p749_p3), %s169_s5, 4294967168  ;;  %p318_p12 = scmp.ne.s32.totalorder %s583_s22, 0 }
  0x5e   : > { %v531_v0 = vmov (!%p318_p12), 0.0  }
  0x5f   : > { %196 = sbr.rel (%p318_p12) target bundleno = 102 (0x66), region = 40  ;;  %197 = vst [vmem:[#allocation10] sm:$0xff] (!%p318_p12), %v531_v0  ;;  %198 = vst [vmem:[#allocation10 + $0x8] sm:$0xff] (!%p318_p12), %v531_v0 }
  0x66 PF: > { %s199_s10 = sld [smem:[#allocation3]]  ;;  %s319_s25 = sld [smem:[#allocation3 + $0x1]]  ;;  %v201_v1 = vld [vmem:[%s163_s24] sm:$0xff]  ;;  %v202_v2 = vld [vmem:[%s172_s6] sm:$0xff]  ;;  %vm532_vm3 = vmmov 1  }
  0x67   : > { %380 = vtanh.f32 %v201_v1  ;;  %v223_v11 = vld [vmem:[#allocation10 + $0x8] sm:$0xff]  ;;  %v219_v13 = vld [vmem:[#allocation10] sm:$0xff]  ;;  %s533_s27 = smov [#allocation10]   ;;  %p340_p13 = scmp.eq.s32.totalorder %s583_s22, 3 }
  0x68   : > { %382 = vtanh.f32 %v202_v2  ;;  %s232_s8 = sshll.u32 %s533_s27, 4  ;;  %s233_s8 = int_to_ptr.vmem [resolvable:$true] %s232_s8 }
  0x69   : > { %s456_s12 = scalar_lea.vmem %s233_s8, 256  ;;  %p463_p8 = scmp.lt.s32.totalorder %s233_s8, %s233_s8 }
  0x6a   : > { %p457_p10 = scmp.ne.s32.totalorder %s233_s8, %s456_s12  ;;  %p464_p5 = scmp.lt.s32.totalorder %s456_s12, %s456_s12 }
  0x6c   : > { %v205_v3 = vstv %s199_s10  ;;  %v207_v4 = vstv %s319_s25  ;;  %p458_p6 = pnand %p457_p10, %p340_p13  ;;  %p465_p9 = por %p464_p5, %p463_p8 }
  0x6d   : > { %vm206_vm0 = vcmp.le.f32.partialorder %v201_v1, %v205_v3  ;;  %vm208_vm1 = vcmp.le.f32.partialorder %v202_v2, %v207_v4 }
  0x6e   : > { %vm214_vm2 = vmxor %vm206_vm0, %vm208_vm1  ;;  %p459_p7 = pneg %p458_p6 }
  0x6f   : > { %vm215_vm4 = vmxor %vm214_vm2, %vm532_vm3 }
  0x70   : > { %p466_p0 = pnand %p465_p9, %p459_p7 }
  0x71   : > { %v381_v5 = vpop.eup %380 }
  0x72   : > { %v383_v6 = vpop.eup %382  ;;  %v209_v7 = vsub.f32 1.0, %v381_v5 }
  0x73   : > { %v211_v8 = vsub.f32 1.0, %v383_v6 }
  0x74   : > { %v210_v9 = vsel %vm206_vm0, %v209_v7, %v381_v5 }
  0x75   : > { %v212_v10 = vsel %vm208_vm1, %v211_v8, %v383_v6 }
  0x76   : > { %v213_v12 = vmul.f32 %v212_v10, %v210_v9 }
  0x78   : > { %v216_v14 = vsel %vm215_vm4, %v213_v12, 0.0  ;;  %v224_v15 = vadd.f32 %v223_v11, %v213_v12 }
  0x79   : > { %v220_v16 = vadd.f32 %v219_v13, %v216_v14 }
  0x7a   : > { %225 = vst [vmem:[#allocation10 + $0x8] sm:$0xff] %v224_v15 }
  0x7b   : > { %221 = vst [vmem:[#allocation10] sm:$0xff] %v220_v16 }
  0x7c   : > { %469 = shalt.err (!%p466_p0)
}
  0x7d   : > { %s470_s9 = scalar_lea.hbm %s741_s4, 256 }
  0x7e   : > { %p471_p1 = scmp.ne.s32.totalorder %s741_s4, %s470_s9  ;;  %p476_p11 = scmp.lt.u32.totalorder %s470_s9, %s741_s4 }
  0x80   : > { %p472_p2 = pnand %p471_p1, %p340_p13 }
  0x82   : > { %p473_p4 = pneg %p472_p2 }
  0x84   : > { %p478_p3 = pnand %p476_p11, %p473_p4 }
  0x86   : > { %481 = shalt.err (!%p478_p3)
}
  0x87   : > { %s534_s15 = smov 128   ;;  %s535_s28 = smov 8  }
  0x88   : > { %329 = dma.vmem_to_hbm [thread:$0]  (%p340_p13), %s233_s8, 256, %s741_s4, [#allocation7], %s534_s15, %s534_s15, %s535_s28  }
  0x89   : > { %509 = dma.done.wait (%p340_p13), [#allocation7], 256  }
  0x8a   : > { %511 = vsyncadd (%p340_p13), [#allocation7], 4294967040 }
  0x8b PF: > { %p25_p12 = scmp.ge.s32.totalorder %s586_s23, 6   ;;  %s750_s19 = smov %s518_s0 }
  0x8c   : > { %s751_s0 = smov %s522_s20  ;;  %s752_s20 = smov %s596_s26 }
  0x8d   : > { %s753_s21 = smov %s586_s23  ;;  %27 = sbr.rel (!%p25_p12) target bundleno = 21 (0x15), region = 83 }
  0x94   :  { %248 = vsyncpa [#allocation6], 1 }
  0x95   :  { %250 = vsyncpa [#allocation6 + $0x1], 1 }
  0x96   :  { %251 = vsyncpa [#allocation9], 1 }
  0x97   :  { %253 = vsyncpa [#allocation9 + $0x1], 1 }
  0x98   :  { %254 = vsyncpa [#allocation7], 1 }
  0x99   :  { %256 = vsyncpa [#allocation7 + $0x1], 1 }

</bundles_post_ra>
